<compile_context>
chip_gen: v7x
topology: tpu7x:2x2x1
jax: 0.10.0
libtpu: 0.0.40
codegen_flags: <defaults>
</compile_context>

<pallas_src>
import math
from functools import partial

import jax
import jax.numpy as jnp
from jax import lax
from jax.experimental import pallas as pl
from jax.experimental.pallas import tpu as pltpu

ALPHA = 1.0
THETA0 = 3          # max-pool kernel size
THETA = 9           # gaussian blur kernel size
SIGMA = 1.0         # fixed (see TODO above)
LOG_CLAMP = -100.0  # torch.nn.BCELoss clamps log terms at -100


# ---------------------------------------------------------------------------
# Parameter setup (plain JAX glue, runs once in the wrapper).
# ---------------------------------------------------------------------------
def _gaussian_kernel1d(ksize, sigma):
    half = (ksize - 1) * 0.5
    x = jnp.linspace(-half, half, ksize)
    pdf = jnp.exp(-0.5 * (x / sigma) ** 2)
    return (pdf / jnp.sum(pdf)).astype(jnp.float32)


def _reflect_blur_matrix(size, ksize, sigma):
    """M[i, p] = weight of input row p in blurred output row i (reflect pad)."""
    w = _gaussian_kernel1d(ksize, sigma)
    half = ksize // 2
    m = jnp.zeros((size, size), jnp.float32)
    base = jnp.arange(size)
    for k in range(ksize):
        idx = base + (k - half)
        idx = jnp.where(idx < 0, -idx, idx)                   # PyTorch 'reflect'
        idx = jnp.where(idx >= size, 2 * size - 2 - idx, idx)
        m = m.at[base, idx].add(w[k])
    return m


# ---------------------------------------------------------------------------
# Pallas kernel: one (TH, GW) lane-packed block of planes per grid step.
# ---------------------------------------------------------------------------
def dwbce_kernel(pred_ref, targ_ref, bh_ref, bwt_ref, lrow_ref, lcol_ref,
                 out_ref, *, alpha, half):
    p = pred_ref[...]          # (TH, GW) f32
    t = targ_ref[...]          # (TH, GW) f32
    lrow = lrow_ref[...]       # plane-local row index (f32), same for all blocks
    lcol = lcol_ref[...]       # plane-local col index (f32)

    inv = 1.0 - t              # >= 0 because target in [0, 1]

    # --- separable max_pool2d(1 - target, k=theta0, stride=1, 'same') --------
    # Shifts run on the XLU via pltpu.roll.  A rolled copy of the plane-local
    # coordinate tells whether each candidate stayed inside its own plane
    # (works for either roll-direction convention).  Invalid candidates are
    # replaced by 0, which equals -inf padding because inv >= 0 and the center
    # element always participates in the max.
    def pool_axis(x, coord, axis):
        n = x.shape[axis]
        out = x
        for d in range(1, half + 1):
            for s in (d, n - d):                 # both directions, any convention
                cand = pltpu.roll(x, s, axis)
                ccrd = pltpu.roll(coord, s, axis)
                ok = jnp.abs(ccrd - coord) <= (half + 0.5)
                out = jnp.maximum(out, jnp.where(ok, cand, 0.0))
        return out

    rowm = pool_axis(inv, lrow, 0)
    pooled = pool_axis(rowm, lcol, 1)
    boundary = pooled - inv

    # --- Gaussian blur (reflect pad): two block-diagonal matmuls on the MXU ---
    rowb = jnp.dot(bh_ref[...], boundary, preferred_element_type=jnp.float32)
    blurred = jnp.dot(rowb, bwt_ref[...], preferred_element_type=jnp.float32)
    weights = blurred + alpha

    # --- BCE (reduction='none'), matching torch.nn.BCELoss log clamp ---------
    # (two-log form kept so soft labels remain correct, not only binary targets)
    log_p = jnp.maximum(jnp.log(p), LOG_CLAMP)
    log_1p = jnp.maximum(jnp.log(1.0 - p), LOG_CLAMP)
    bce = -(t * log_p + (1.0 - t) * log_1p)

    # Per-step partial sum -> this grid axis stays fully parallel.
    out_ref[0] = jnp.sum(bce * weights, keepdims=True)


# ---------------------------------------------------------------------------
# Wrapper
# ---------------------------------------------------------------------------
def distance_weight_bce_loss(predict, target, *, alpha=ALPHA, theta0=THETA0,
                             theta=THETA, sigma=SIGMA, reduction='mean'):
    assert predict.shape == target.shape
    B, C, H, W = predict.shape
    N = B * C
    half = (theta0 - 1) // 2
    assert H > 2 * half and W > 2 * half, "plane too small for this pool radius"

    p = predict.reshape(N, H, W).astype(jnp.float32)
    t = target.reshape(N, H, W).astype(jnp.float32)

    # ---- packing choices: G planes along lanes, TN_g plane-groups along rows ----
    G = 1 if W >= 128 else max(1, 128 // W)          # lane-dense packing
    num_groups = -(-N // G)
    TN_g = min(max(1, 256 // H), num_groups)         # target ~256 block rows
    if TN_g < num_groups:
        req = 8 // math.gcd(H, 8)                    # keep block rows multiple of 8
        TN_g = min(-(-TN_g // req) * req, num_groups)
    num_groups = -(-num_groups // TN_g) * TN_g       # pad group count to multiple
    TH, GW = TN_g * H, G * W
    num_blocks = num_groups // TN_g

    n_pad = num_groups * G - N
    if n_pad:
        # neutral planes: predict=1, target=1  =>  bce == 0, contributes nothing,
        # and plane-isolation (masks + block-diag blur) keeps them from leaking.
        pad_plane = jnp.ones((n_pad, H, W), jnp.float32)
        p = jnp.concatenate([p, pad_plane], axis=0)
        t = jnp.concatenate([t, pad_plane], axis=0)

    def stack(x):    # (Npad, H, W) -> (num_groups*H, G*W), lane-pack G planes
        return (x.reshape(num_groups, G, H, W)
                 .transpose(0, 2, 1, 3)
                 .reshape(num_groups * H, GW))

    p2 = stack(p)
    t2 = stack(t)

    # Block-diagonal reflect-blur matrices covering every packed plane at once.
    bh = _reflect_blur_matrix(H, theta, sigma)
    bw = _reflect_blur_matrix(W, theta, sigma)
    bh_bd = jnp.kron(jnp.eye(TN_g, dtype=jnp.float32), bh)     # (TH, TH)
    bwt_bd = jnp.kron(jnp.eye(G, dtype=jnp.float32), bw.T)     # (GW, GW)

    # Plane-local coordinates (identical for every block) for the roll masks.
    lrow = jnp.broadcast_to(
        jnp.tile(jnp.arange(H, dtype=jnp.float32), TN_g)[:, None], (TH, GW))
    lcol = jnp.broadcast_to(
        jnp.tile(jnp.arange(W, dtype=jnp.float32), G)[None, :], (TH, GW))

    kernel = partial(dwbce_kernel, alpha=float(alpha), half=int(half))

    # NOTE: bh_bd / bwt_bd / lrow / lcol have constant block indices; at very large
    # H/W they could be single-buffered (pipeline_mode) or DMA'd once into scratch.
    partials = pl.pallas_call(
        kernel,
        out_shape=jax.ShapeDtypeStruct((num_blocks, 1, 1), jnp.float32),
        grid_spec=pltpu.PrefetchScalarGridSpec(
            num_scalar_prefetch=0,
            grid=(num_blocks,),
            in_specs=[
                pl.BlockSpec((TH, GW), lambda n: (n, 0)),   # predict block
                pl.BlockSpec((TH, GW), lambda n: (n, 0)),   # target block
                pl.BlockSpec((TH, TH), lambda n: (0, 0)),   # row-blur (block-diag)
                pl.BlockSpec((GW, GW), lambda n: (0, 0)),   # col-blur^T (block-diag)
                pl.BlockSpec((TH, GW), lambda n: (0, 0)),   # plane-local row idx
                pl.BlockSpec((TH, GW), lambda n: (0, 0)),   # plane-local col idx
            ],
            out_specs=pl.BlockSpec((1, 1, 1), lambda n: (n, 0, 0)),
        ),
        compiler_params=pltpu.CompilerParams(
            dimension_semantics=("parallel",),
            vmem_limit_bytes=32 * 1024 * 1024),
    )(p2, t2, bh_bd, bwt_bd, lrow, lcol)

    total = jnp.sum(partials)
    if reduction == 'mean':
        return total / float(N * H * W)
    elif reduction == 'sum':
        return total
    else:
        raise NotImplementedError("reduction='none' not implemented")  # TODO(synk)


# ---------------------------------------------------------------------------
# Pure-JAX reference (for correctness check only)
# ---------------------------------------------------------------------------
def reference_loss(predict, target, *, alpha=ALPHA, theta0=THETA0,
                   theta=THETA, sigma=SIGMA):
    B, C, H, W = predict.shape
    inv = 1.0 - target
    pad = (theta0 - 1) // 2
    pooled = lax.reduce_window(
        inv, -jnp.inf, lax.max,
        window_dimensions=(1, 1, theta0, theta0),
        window_strides=(1, 1, 1, 1),
        padding=((0, 0), (0, 0), (pad, pad), (pad, pad)))
    boundary = pooled - inv
    bh = _reflect_blur_matrix(H, theta, sigma)
    bw = _reflect_blur_matrix(W, theta, sigma)
    blurred = jnp.einsum('hp,bcpq,wq->bchw', bh, boundary, bw)
    weights = blurred + alpha
    log_p = jnp.maximum(jnp.log(predict), LOG_CLAMP)
    log_1p = jnp.maximum(jnp.log(1.0 - predict), LOG_CLAMP)
    bce = -(target * log_p + (1.0 - target) * log_1p)
    return jnp.mean(bce * weights)


if __name__ == "__main__":
    key = jax.random.PRNGKey(0)
    k1, k2 = jax.random.split(key)
    B, C, H, W = 2, 4, 16, 16
    predict = jax.nn.sigmoid(jax.random.normal(k1, (B, C, H, W), jnp.float32))
    target = (jax.random.uniform(k2, (B, C, H, W)) > 0.5).astype(jnp.float32)

    loss = distance_weight_bce_loss(predict, target)
    loss = jax.block_until_ready(loss)

    ref = reference_loss(predict, target)
    assert jnp.allclose(loss, ref, rtol=1e-3, atol=1e-3), (float(loss), float(ref))
    print("KERNEL_OK")
</pallas_src>

<mosaic_0001>
module attributes {stable_mosaic.version = 11 : i64} {
  func.func @dwbce_kernel(%arg0: i32, %arg1: memref<16x128xf32, #tpu.memory_space<vmem>>, %arg2: memref<16x128xf32, #tpu.memory_space<vmem>>, %arg3: memref<16x16xf32, #tpu.memory_space<vmem>>, %arg4: memref<128x128xf32, #tpu.memory_space<vmem>>, %arg5: memref<16x128xf32, #tpu.memory_space<vmem>>, %arg6: memref<16x128xf32, #tpu.memory_space<vmem>>, %arg7: memref<1x1x1xf32, #tpu.memory_space<vmem>>) attributes {dimension_semantics = [#tpu.dimension_semantics<parallel>], iteration_bounds = array<i64: 1>, scalar_prefetch = 0 : i64, scratch_operands = 0 : i64, tpu.core_type = #tpu.core_type<tc>, window_params = [{transform_indices = @transform_0, window_bounds = array<i64: 16, 128>}, {transform_indices = @transform_1, window_bounds = array<i64: 16, 128>}, {pipeline_mode = #tpu.pipeline_mode<synchronous>, transform_indices = @transform_2, window_bounds = array<i64: 16, 16>}, {pipeline_mode = #tpu.pipeline_mode<synchronous>, transform_indices = @transform_3, window_bounds = array<i64: 128, 128>}, {pipeline_mode = #tpu.pipeline_mode<synchronous>, transform_indices = @transform_4, window_bounds = array<i64: 16, 128>}, {pipeline_mode = #tpu.pipeline_mode<synchronous>, transform_indices = @transform_5, window_bounds = array<i64: 16, 128>}, {transform_indices = @transform_6, window_bounds = array<i64: 1, 1, 1>}]} {
    %c0 = arith.constant 0 : index
    %c0_0 = arith.constant 0 : index
    %0 = vector.load %arg1[%c0, %c0_0] : memref<16x128xf32, #tpu.memory_space<vmem>>, vector<16x128xf32>
    %c0_1 = arith.constant 0 : index
    %c0_2 = arith.constant 0 : index
    %1 = vector.load %arg2[%c0_1, %c0_2] : memref<16x128xf32, #tpu.memory_space<vmem>>, vector<16x128xf32>
    %c0_3 = arith.constant 0 : index
    %c0_4 = arith.constant 0 : index
    %2 = vector.load %arg5[%c0_3, %c0_4] : memref<16x128xf32, #tpu.memory_space<vmem>>, vector<16x128xf32>
    %c0_5 = arith.constant 0 : index
    %c0_6 = arith.constant 0 : index
    %3 = vector.load %arg6[%c0_5, %c0_6] : memref<16x128xf32, #tpu.memory_space<vmem>>, vector<16x128xf32>
    %cst = arith.constant 1.000000e+00 : f32
    %4 = vector.broadcast %cst : f32 to vector<16x128xf32>
    %5 = arith.subf %4, %1 : vector<16x128xf32>
    %c1_i32 = arith.constant 1 : i32
    %6 = tpu.dynamic_rotate %5 by %c1_i32 dim 0 : vector<16x128xf32>, i32 -> vector<16x128xf32>
    %c1_i32_7 = arith.constant 1 : i32
    %7 = tpu.dynamic_rotate %2 by %c1_i32_7 dim 0 : vector<16x128xf32>, i32 -> vector<16x128xf32>
    %8 = arith.subf %7, %2 : vector<16x128xf32>
    %9 = math.absf %8 : vector<16x128xf32>
    %cst_8 = arith.constant 1.500000e+00 : f32
    %10 = vector.broadcast %cst_8 : f32 to vector<16x128xf32>
    %11 = arith.cmpf ole, %9, %10 : vector<16x128xf32>
    %cst_9 = arith.constant 0.000000e+00 : f32
    %12 = vector.broadcast %cst_9 : f32 to vector<16x128xf32>
    %13 = arith.select %11, %6, %12 : vector<16x128xi1>, vector<16x128xf32>
    %14 = arith.maximumf %5, %13 : vector<16x128xf32>
    %c15_i32 = arith.constant 15 : i32
    %15 = tpu.dynamic_rotate %5 by %c15_i32 dim 0 : vector<16x128xf32>, i32 -> vector<16x128xf32>
    %c15_i32_10 = arith.constant 15 : i32
    %16 = tpu.dynamic_rotate %2 by %c15_i32_10 dim 0 : vector<16x128xf32>, i32 -> vector<16x128xf32>
    %17 = arith.subf %16, %2 : vector<16x128xf32>
    %18 = math.absf %17 : vector<16x128xf32>
    %cst_11 = arith.constant 1.500000e+00 : f32
    %19 = vector.broadcast %cst_11 : f32 to vector<16x128xf32>
    %20 = arith.cmpf ole, %18, %19 : vector<16x128xf32>
    %cst_12 = arith.constant 0.000000e+00 : f32
    %21 = vector.broadcast %cst_12 : f32 to vector<16x128xf32>
    %22 = arith.select %20, %15, %21 : vector<16x128xi1>, vector<16x128xf32>
    %23 = arith.maximumf %14, %22 : vector<16x128xf32>
    %c1_i32_13 = arith.constant 1 : i32
    %24 = tpu.dynamic_rotate %23 by %c1_i32_13 dim 1 : vector<16x128xf32>, i32 -> vector<16x128xf32>
    %c1_i32_14 = arith.constant 1 : i32
    %25 = tpu.dynamic_rotate %3 by %c1_i32_14 dim 1 : vector<16x128xf32>, i32 -> vector<16x128xf32>
    %26 = arith.subf %25, %3 : vector<16x128xf32>
    %27 = math.absf %26 : vector<16x128xf32>
    %cst_15 = arith.constant 1.500000e+00 : f32
    %28 = vector.broadcast %cst_15 : f32 to vector<16x128xf32>
    %29 = arith.cmpf ole, %27, %28 : vector<16x128xf32>
    %cst_16 = arith.constant 0.000000e+00 : f32
    %30 = vector.broadcast %cst_16 : f32 to vector<16x128xf32>
    %31 = arith.select %29, %24, %30 : vector<16x128xi1>, vector<16x128xf32>
    %32 = arith.maximumf %23, %31 : vector<16x128xf32>
    %c127_i32 = arith.constant 127 : i32
    %33 = tpu.dynamic_rotate %23 by %c127_i32 dim 1 : vector<16x128xf32>, i32 -> vector<16x128xf32>
    %c127_i32_17 = arith.constant 127 : i32
    %34 = tpu.dynamic_rotate %3 by %c127_i32_17 dim 1 : vector<16x128xf32>, i32 -> vector<16x128xf32>
    %35 = arith.subf %34, %3 : vector<16x128xf32>
    %36 = math.absf %35 : vector<16x128xf32>
    %cst_18 = arith.constant 1.500000e+00 : f32
    %37 = vector.broadcast %cst_18 : f32 to vector<16x128xf32>
    %38 = arith.cmpf ole, %36, %37 : vector<16x128xf32>
    %cst_19 = arith.constant 0.000000e+00 : f32
    %39 = vector.broadcast %cst_19 : f32 to vector<16x128xf32>
    %40 = arith.select %38, %33, %39 : vector<16x128xi1>, vector<16x128xf32>
    %41 = arith.maximumf %32, %40 : vector<16x128xf32>
    %42 = arith.subf %41, %5 : vector<16x128xf32>
    %c0_20 = arith.constant 0 : index
    %c0_21 = arith.constant 0 : index
    %43 = vector.load %arg3[%c0_20, %c0_21] : memref<16x16xf32, #tpu.memory_space<vmem>>, vector<16x16xf32>
    %cst_22 = arith.constant dense<0.000000e+00> : vector<16x128xf32>
    %44 = tpu.matmul %43, %42, %cst_22 {dimension_numbers = #tpu.dot_dimension_numbers<[1], [0], [0], [1], [0, 0, 1, 1], [], []>} : vector<16x16xf32>, vector<16x128xf32>, vector<16x128xf32> -> vector<16x128xf32>
    %c0_23 = arith.constant 0 : index
    %c0_24 = arith.constant 0 : index
    %45 = vector.load %arg4[%c0_23, %c0_24] : memref<128x128xf32, #tpu.memory_space<vmem>>, vector<128x128xf32>
    %cst_25 = arith.constant dense<0.000000e+00> : vector<16x128xf32>
    %46 = tpu.matmul %44, %45, %cst_25 {dimension_numbers = #tpu.dot_dimension_numbers<[1], [0], [0], [1], [0, 0, 1, 1], [], []>} : vector<16x128xf32>, vector<128x128xf32>, vector<16x128xf32> -> vector<16x128xf32>
    %cst_26 = arith.constant 1.000000e+00 : f32
    %47 = vector.broadcast %cst_26 : f32 to vector<16x128xf32>
    %48 = arith.addf %46, %47 : vector<16x128xf32>
    %49 = math.log %0 : vector<16x128xf32>
    %cst_27 = arith.constant -1.000000e+02 : f32
    %50 = vector.broadcast %cst_27 : f32 to vector<16x128xf32>
    %51 = arith.maximumf %49, %50 : vector<16x128xf32>
    %cst_28 = arith.constant 1.000000e+00 : f32
    %52 = vector.broadcast %cst_28 : f32 to vector<16x128xf32>
    %53 = arith.subf %52, %0 : vector<16x128xf32>
    %54 = math.log %53 : vector<16x128xf32>
    %cst_29 = arith.constant -1.000000e+02 : f32
    %55 = vector.broadcast %cst_29 : f32 to vector<16x128xf32>
    %56 = arith.maximumf %54, %55 : vector<16x128xf32>
    %57 = arith.mulf %1, %51 : vector<16x128xf32>
    %cst_30 = arith.constant 1.000000e+00 : f32
    %58 = vector.broadcast %cst_30 : f32 to vector<16x128xf32>
    %59 = arith.subf %58, %1 : vector<16x128xf32>
    %60 = arith.mulf %59, %56 : vector<16x128xf32>
    %61 = arith.addf %57, %60 : vector<16x128xf32>
    %cst_31 = arith.constant 0.000000e+00 : f32
    %62 = vector.broadcast %cst_31 : f32 to vector<16x128xf32>
    %63 = arith.subf %62, %61 : vector<16x128xf32>
    %64 = arith.mulf %63, %48 : vector<16x128xf32>
    %65 = vector.shape_cast %64 : vector<16x128xf32> to vector<1x16x128xf32>
    %cst_32 = arith.constant dense<0.000000e+00> : vector<1xf32>
    %66 = vector.multi_reduction <add>, %65, %cst_32 [1, 2] : vector<1x16x128xf32> to vector<1xf32>
    %67 = vector.shape_cast %66 : vector<1xf32> to vector<1x1x1xf32>
    %68 = vector.extract %67[0, 0, 0] : f32 from vector<1x1x1xf32>
    %69 = vector.broadcast %68 : f32 to vector<1x1xf32>
    %c0_33 = arith.constant 0 : index
    %c0_34 = arith.constant 0 : index
    %c0_35 = arith.constant 0 : index
    %70 = vector.load %arg7[%c0_33, %c0_34, %c0_35] : memref<1x1x1xf32, #tpu.memory_space<vmem>>, vector<1x1x1xf32>
    %71 = vector.shape_cast %70 : vector<1x1x1xf32> to vector<1x1xf32>
    %72 = vector.shape_cast %69 : vector<1x1xf32> to vector<1x1x1xf32>
    tpu.vector_store %arg7[%c0_33, %c0_34, %c0_35], %72 {strides = array<i32>} : memref<1x1x1xf32, #tpu.memory_space<vmem>>, vector<1x1x1xf32>,
    return
  }
  func.func @transform_0(%arg0: i32) -> (i32, i32) {
    %c0_i32 = arith.constant 0 : i32
    %c0_i32_0 = arith.constant 0 : i32
    return %arg0, %c0_i32 : i32, i32
  }
  func.func @transform_1(%arg0: i32) -> (i32, i32) {
    %c0_i32 = arith.constant 0 : i32
    %c0_i32_0 = arith.constant 0 : i32
    return %arg0, %c0_i32 : i32, i32
  }
  func.func @transform_2(%arg0: i32) -> (i32, i32) {
    %c0_i32 = arith.constant 0 : i32
    %c0_i32_0 = arith.constant 0 : i32
    %c0_i32_1 = arith.constant 0 : i32
    return %c0_i32, %c0_i32_0 : i32, i32
  }
  func.func @transform_3(%arg0: i32) -> (i32, i32) {
    %c0_i32 = arith.constant 0 : i32
    %c0_i32_0 = arith.constant 0 : i32
    %c0_i32_1 = arith.constant 0 : i32
    return %c0_i32, %c0_i32_0 : i32, i32
  }
  func.func @transform_4(%arg0: i32) -> (i32, i32) {
    %c0_i32 = arith.constant 0 : i32
    %c0_i32_0 = arith.constant 0 : i32
    %c0_i32_1 = arith.constant 0 : i32
    return %c0_i32, %c0_i32_0 : i32, i32
  }
  func.func @transform_5(%arg0: i32) -> (i32, i32) {
    %c0_i32 = arith.constant 0 : i32
    %c0_i32_0 = arith.constant 0 : i32
    %c0_i32_1 = arith.constant 0 : i32
    return %c0_i32, %c0_i32_0 : i32, i32
  }
  func.func @transform_6(%arg0: i32) -> (i32, i32, i32) {
    %c0_i32 = arith.constant 0 : i32
    %c0_i32_0 = arith.constant 0 : i32
    %c0_i32_1 = arith.constant 0 : i32
    return %arg0, %c0_i32, %c0_i32_0 : i32, i32, i32
  }
}

</mosaic_0001>

<bundles_post_ra>
// kernel: tpu_custom_call.1
= control target key start
LH: loop header
LB: loop body
LE: loop exit
PB: predicated region body
PF: predicated region fallthrough
CT: control target
= control target key end

     0   :  { %11 = vsyncpa [#allocation3], 0  ;;  %s885_s0 = inlined_call_operand.hbm [shape: f32[16,128], index: 0, kind: input, shape index: {}]   ;;  %s886_s1 = inlined_call_operand.hbm [shape: f32[16,128], index: 1, kind: input, shape index: {}]   ;;  %s887_s2 = inlined_call_operand.hbm [shape: f32[16,16], index: 2, kind: input, shape index: {}]   ;;  %s888_s3 = inlined_call_operand.hbm [shape: f32[128,128], index: 3, kind: input, shape index: {}]   ;;  %s889_s4 = inlined_call_operand.hbm [shape: f32[16,128], index: 4, kind: input, shape index: {}]   ;;  %s890_s5 = inlined_call_operand.vmem [shape: f32[16,128], index: 5, kind: input, shape index: {}]   ;;  %s891_s6 = inlined_call_operand.hbm [shape: f32[1,1,1], index: 6, kind: output, shape index: {}]  }
   0x1   :  { %12 = vsyncpa [#allocation6], 0 }
   0x2   :  { %13 = vsyncpa [#allocation9], 0 }
   0x3   :  { %14 = vsyncpa [#allocation4], 0  ;;  %s671_s21 = smov [#allocation5]   ;;  %s672_s23 = smov [#allocation8]  }
   0x4   :  { %s32_s22 = sshll.u32 %s671_s21, 4  ;;  %s56_s24 = sshll.u32 %s672_s23, 4  ;;  %s33_s22 = int_to_ptr.vmem [resolvable:$true] %s32_s22  ;;  %s716_s24 = int_to_ptr.vmem [resolvable:$true] %s56_s24 }
   0x5   :  { %s531_s27 = scalar_lea.hbm %s886_s1, 256 }
   0x6   :  { %p532_p0 = scmp.ne.s32.totalorder %s886_s1, %s531_s27  ;;  %p535_p1 = scmp.lt.u32.totalorder %s531_s27, %s886_s1 }
   0x8   :  { %p537_p2 = pnand %p535_p1, %p532_p0 }
   0xa   :  { %540 = shalt.err (!%p537_p2)
}
   0xb   :  { %s541_s8 = scalar_lea.vmem %s33_s22, 256  ;;  %p546_p4 = scmp.lt.s32.totalorder %s33_s22, %s33_s22 }
   0xc   :  { %p542_p3 = scmp.ne.s32.totalorder %s33_s22, %s541_s8  ;;  %p547_p5 = scmp.lt.s32.totalorder %s541_s8, %s541_s8 }
   0xe   :  { %p548_p6 = por %p547_p5, %p546_p4 }
  0x10   :  { %p549_p7 = pnand %p548_p6, %p542_p3 }
  0x12   :  { %552 = shalt.err (!%p549_p7)
}
  0x13   :  { %s673_s9 = smov 128   ;;  %s674_s10 = smov 8  }
  0x14   :  { %38 = dma.hbm_to_vmem [thread:$0]  %s886_s1, 256, %s33_s22, [#allocation6], %s673_s9, %s673_s9, %s674_s10  }
  0x15   :  { %s553_s15 = scalar_lea.hbm %s888_s3, 2048 }
  0x16   :  { %p554_p8 = scmp.ne.s32.totalorder %s888_s3, %s553_s15  ;;  %p557_p9 = scmp.lt.u32.totalorder %s553_s15, %s888_s3 }
  0x18   :  { %p559_p10 = pnand %p557_p9, %p554_p8 }
  0x1a   :  { %562 = shalt.err (!%p559_p10)
}
  0x1b   :  { %s563_s20 = scalar_lea.vmem %s716_s24, 2048  ;;  %p568_p12 = scmp.lt.s32.totalorder %s716_s24, %s716_s24 }
  0x1c   :  { %p564_p11 = scmp.ne.s32.totalorder %s716_s24, %s563_s20  ;;  %p569_p13 = scmp.lt.s32.totalorder %s563_s20, %s563_s20 }
  0x1e   :  { %p570_p0 = por %p569_p13, %p568_p12 }
  0x20   :  { %p571_p1 = pnand %p570_p0, %p564_p11 }
  0x22   :  { %574 = shalt.err (!%p571_p1)
}
  0x23   :  { %62 = dma.hbm_to_vmem [thread:$0]  %s888_s3, 2048, %s716_s24, [#allocation9], %s673_s9, %s673_s9, %s674_s10  }
  0x24   :  { %s675_s22 = smov [#allocation2]   ;;  %s676_s25 = smov [#allocation7]  }
  0x25   :  { %s20_s23 = sshll.u32 %s675_s22, 4  ;;  %s44_s26 = sshll.u32 %s676_s25, 4  ;;  %s21_s23 = int_to_ptr.vmem [resolvable:$true] %s20_s23  ;;  %s753_s26 = int_to_ptr.vmem [resolvable:$true] %s44_s26 }
  0x26   :  { %s575_s29 = scalar_lea.hbm %s885_s0, 256 }
  0x27   :  { %p576_p2 = scmp.ne.s32.totalorder %s885_s0, %s575_s29  ;;  %p579_p3 = scmp.lt.u32.totalorder %s575_s29, %s885_s0 }
  0x29   :  { %p581_p4 = pnand %p579_p3, %p576_p2 }
  0x2b   :  { %584 = shalt.err (!%p581_p4)
}
  0x2c   :  { %s585_s3 = scalar_lea.vmem %s21_s23, 256  ;;  %p590_p6 = scmp.lt.s32.totalorder %s21_s23, %s21_s23 }
  0x2d   :  { %p586_p5 = scmp.ne.s32.totalorder %s21_s23, %s585_s3  ;;  %p591_p7 = scmp.lt.s32.totalorder %s585_s3, %s585_s3 }
  0x2f   :  { %p592_p8 = por %p591_p7, %p590_p6 }
  0x31   :  { %p593_p9 = pnand %p592_p8, %p586_p5 }
  0x33   :  { %596 = shalt.err (!%p593_p9)
}
  0x34   :  { %26 = dma.hbm_to_vmem [thread:$0]  %s885_s0, 256, %s21_s23, [#allocation3], %s673_s9, %s673_s9, %s674_s10  }
  0x35   :  { %s597_s15 = scalar_lea.hbm %s887_s2, 256 }
  0x36   :  { %p598_p10 = scmp.ne.s32.totalorder %s887_s2, %s597_s15  ;;  %p601_p11 = scmp.lt.u32.totalorder %s597_s15, %s887_s2 }
  0x38   :  { %p603_p12 = pnand %p601_p11, %p598_p10 }
  0x3a   :  { %606 = shalt.err (!%p603_p12)
}
  0x3b   :  { %s607_s20 = scalar_lea.vmem %s753_s26, 256  ;;  %p612_p0 = scmp.lt.s32.totalorder %s753_s26, %s753_s26 }
  0x3c   :  { %p608_p13 = scmp.ne.s32.totalorder %s753_s26, %s607_s20  ;;  %p613_p1 = scmp.lt.s32.totalorder %s607_s20, %s607_s20 }
  0x3e   :  { %p614_p2 = por %p613_p1, %p612_p0 }
  0x40   :  { %p615_p3 = pnand %p614_p2, %p608_p13 }
  0x42   :  { %618 = shalt.err (!%p615_p3)
}
  0x43   :  { %50 = dma.hbm_to_vmem [thread:$0]  %s887_s2, 256, %s753_s26, [#allocation6], %s673_s9, %s673_s9, %s674_s10  }
  0x44   :  { %s677_s21 = smov [#allocation10]   ;;  %s619_s27 = scalar_lea.hbm %s889_s4, 256 }
  0x45   :  { %s68_s22 = sshll.u32 %s677_s21, 4  ;;  %p620_p4 = scmp.ne.s32.totalorder %s889_s4, %s619_s27  ;;  %s69_s22 = int_to_ptr.vmem [resolvable:$true] %s68_s22 }
  0x46   :  { %p623_p5 = scmp.lt.u32.totalorder %s619_s27, %s889_s4 }
  0x48   :  { %p625_p6 = pnand %p623_p5, %p620_p4 }
  0x4a   :  { %628 = shalt.err (!%p625_p6)
}
  0x4b   :  { %s629_s8 = scalar_lea.vmem %s69_s22, 256  ;;  %p634_p8 = scmp.lt.s32.totalorder %s69_s22, %s69_s22 }
  0x4c   :  { %p630_p7 = scmp.ne.s32.totalorder %s69_s22, %s629_s8  ;;  %p635_p9 = scmp.lt.s32.totalorder %s629_s8, %s629_s8 }
  0x4e   :  { %p636_p10 = por %p635_p9, %p634_p8 }
  0x50   :  { %p637_p11 = pnand %p636_p10, %p630_p7 }
  0x52   :  { %640 = shalt.err (!%p637_p11)
}
  0x53   :  { %74 = dma.hbm_to_vmem [thread:$0]  %s889_s4, 256, %s69_s22, [#allocation9], %s673_s9, %s673_s9, %s674_s10  }
  0x54   :  { %663 = dma.done.wait [#allocation3], 256  }
  0x55   :  { %664 = vsyncadd [#allocation3], 4294967040 }
  0x56   :  { %665 = dma.done.wait [#allocation6], 512  }
  0x57   :  { %666 = vsyncadd [#allocation6], 4294966784 }
  0x58   :  { %667 = dma.done.wait [#allocation9], 2304  }
  0x59   :  { %668 = vsyncadd [#allocation9], 4294964992  ;;  %v104_v0 = vlaneseq  ;;  %v808_v2 = vld [vmem:[%s890_s5] sm:$0xff]  ;;  %v810_v3 = vld [vmem:[#allocation5] sm:$0xff]  ;;  %s678_s24 = smov 1   ;;  %s679_s4 = smov 127  }
  0x5a   :  { %146 = vrot.lane.b32.xlu0 %v808_v2, %s678_s24  ;;  %164 = vrot.lane.b32.xlu1 %v808_v2, %s679_s4  ;;  %v816_v4 = vld [vmem:[#allocation5 + $0x8] sm:$0xff]  ;;  %v96_v5 = vld [vmem:[#allocation10] sm:$0xff]  ;;  %v819_v7 = vsub.f32 1.0, %v810_v3  ;;  %v824_v8 = vld [vmem:[%s890_s5 + $0x8] sm:$0xff]  ;;  %vm182_vm6 = vcmask 130048   ;;  %s680_s5 = smov [#allocation11]  }
  0x5b   :  { %v105_v1 = vshrl.u32 %v104_v0, 7  ;;  %v97_v6 = vld [vmem:[#allocation10 + $0x8] sm:$0xff]  ;;  %v827_v9 = vsub.f32 1.0, %v816_v4  ;;  %v109_v10 = vrot.slane %v96_v5, 7  ;;  %v128_v12 = vrot.slane %v96_v5, 1  ;;  %v180_v42 = vld [vmem:[#allocation7] sm:$0xff] }
  0x5c   :  { %v110_v11 = vrot.slane %v97_v6, 7  ;;  %v102_v13 = vrot.slane %v819_v7, 7  ;;  %v123_v14 = vrot.slane %v819_v7, 1  ;;  %v129_v15 = vrot.slane %v97_v6, 1  ;;  %437 = vmatprep.mubr.msk.f32.mxu0 %vm182_vm6, %v180_v42  ;;  %v264_v43 = vld [vmem:[#allocation8] sm:$0xff]  ;;  %v265_v44 = vld [vmem:[#allocation8 + $0x8] sm:$0xff] }
  0x5d   :  { %vm106_vm0 = vcmp.lt.s32.totalorder %v105_v1, 1  ;;  %vm125_vm1 = vcmp.lt.s32.totalorder %v105_v1, 7  ;;  %v103_v16 = vrot.slane %v827_v9, 7  ;;  %v124_v18 = vrot.slane %v827_v9, 1  ;;  %v266_v45 = vld [vmem:[#allocation8 + $0x10] sm:$0xff]  ;;  %v267_v47 = vld [vmem:[#allocation8 + $0x18] sm:$0xff] }
  0x5e   :  { %v112_v17 = vsel %vm106_vm0, %v110_v11, %v109_v10  ;;  %v111_v19 = vsel %vm106_vm0, %v109_v10, %v110_v11  ;;  %148 = vrot.lane.b32.xlu0 %v824_v8, %s678_s24  ;;  %166 = vrot.lane.b32.xlu1 %v824_v8, %s679_s4  ;;  %v130_v21 = vsel %vm125_vm1, %v128_v12, %v129_v15  ;;  %v268_v49 = vld [vmem:[#allocation8 + $0x20] sm:$0xff]  ;;  %v269_v50 = vld [vmem:[#allocation8 + $0x28] sm:$0xff]  ;;  %v270_v52 = vld [vmem:[#allocation8 + $0x30] sm:$0xff]  ;;  %s398_s12 = sshll.u32 %s680_s5, 4  ;;  %vm390_vm11 = vcmask 0   ;;  %s399_s12 = int_to_ptr.vmem [resolvable:$true] %s398_s12 }
  0x5f   :  { %v113_v20 = vsub.f32 %v112_v17, %v96_v5  ;;  %v114_v22 = vsub.f32 %v111_v19, %v97_v6  ;;  %v108_v23 = vsel %vm106_vm0, %v103_v16, %v102_v13  ;;  %v132_v24 = vsub.f32 %v130_v21, %v96_v5  ;;  %v271_v53 = vld [vmem:[#allocation8 + $0x38] sm:$0xff]  ;;  %v272_v55 = vld [vmem:[#allocation8 + $0x40] sm:$0xff]  ;;  %v273_v56 = vld [vmem:[#allocation8 + $0x48] sm:$0xff]  ;;  %s641_s14 = scalar_lea.vmem %s399_s12, 16  ;;  %s645_s15 = scalar_lea.vmem %s399_s12, 32 }
  0x60   :  { %v107_v26 = vsel %vm106_vm0, %v102_v13, %v103_v16  ;;  %v131_v28 = vsel %vm125_vm1, %v129_v15, %v128_v12  ;;  %v126_v29 = vsel %vm125_vm1, %v123_v14, %v124_v18  ;;  %v127_v32 = vsel %vm125_vm1, %v124_v18, %v123_v14  ;;  %v274_v58 = vld [vmem:[#allocation8 + $0x50] sm:$0xff]  ;;  %v275_v59 = vld [vmem:[#allocation8 + $0x58] sm:$0xff]  ;;  %v276_v61 = vld [vmem:[#allocation8 + $0x60] sm:$0xff]  ;;  %p642_p12 = scmp.ne.s32.totalorder %s399_s12, %s641_s14  ;;  %p646_p13 = scmp.lt.s32.totalorder %s399_s12, %s399_s12 }
  0x61   :  { %v115_v25 = vand.u32 2147483647, %v113_v20  ;;  %v116_v27 = vand.u32 2147483647, %v114_v22  ;;  %v134_v30 = vand.u32 2147483647, %v132_v24  ;;  %v133_v31 = vsub.f32 %v131_v28, %v97_v6  ;;  %p647_p0 = scmp.lt.s32.totalorder %s645_s15, %s641_s14 }
  0x62   :  { %v479_v46 = vpack.c.bf16 %v265_v44, %v264_v43  ;;  %v483_v48 = vpack.c.bf16 %v267_v47, %v266_v45  ;;  %v487_v51 = vpack.c.bf16 %v269_v50, %v268_v49  ;;  %v491_v54 = vpack.c.bf16 %v271_v53, %v270_v52  ;;  %v277_v62 = vld [vmem:[#allocation8 + $0x68] sm:$0xff]  ;;  %v278_v0 = vld [vmem:[#allocation8 + $0x70] sm:$0xff]  ;;  %v279_v1 = vld [vmem:[#allocation8 + $0x78] sm:$0xff] }
  0x63   :  { %vm117_vm2 = vcmp.le.f32.partialorder %v115_v25, 1.5  ;;  %vm118_vm3 = vcmp.le.f32.partialorder %v116_v27, 1.5  ;;  %vm136_vm4 = vcmp.le.f32.partialorder %v134_v30, 1.5  ;;  %v135_v35 = vand.u32 2147483647, %v133_v31  ;;  %p648_p1 = por %p647_p0, %p646_p13 }
  0x64   :  { %v119_v33 = vsel %vm117_vm2, %v108_v23, 0.0  ;;  %v120_v34 = vsel %vm118_vm3, %v107_v26, 0.0  ;;  %v138_v37 = vsel %vm136_vm4, %v126_v29, 0.0  ;;  %480 = vmatprep.subr.bf16.mxu1 %v479_v46  ;;  %v495_v57 = vpack.c.bf16 %v273_v56, %v272_v55 }
  0x65   :  { %v121_v36 = vmax.f32 %v819_v7, %v119_v33  ;;  %v122_v38 = vmax.f32 %v827_v9, %v120_v34  ;;  %vm137_vm5 = vcmp.le.f32.partialorder %v135_v35, 1.5  ;;  %482 = vmatpush3.bf16.msra.mxu1 %v479_v46  ;;  %v499_v60 = vpack.c.bf16 %v275_v59, %v274_v58  ;;  %v181_v34 = vld [vmem:[#allocation7 + $0x8] sm:$0xff]  ;;  %p649_p2 = pnand %p648_p1, %p642_p12 }
  0x66   :  { %v139_v40 = vsel %vm137_vm5, %v127_v32, 0.0  ;;  %484 = vmatprep.subr.bf16.mxu1 %v483_v48  ;;  %v503_v63 = vpack.c.bf16 %v277_v62, %v276_v61  ;;  %v507_v5 = vpack.c.bf16 %v279_v1, %v278_v0 }
  0x67   :  { %v847_v39 = vmax.f32 %v121_v36, %v138_v37  ;;  %v849_v41 = vmax.f32 %v122_v38, %v139_v40  ;;  %v93_v37 = vld [vmem:[#allocation2 + $0x8] sm:$0xff]  ;;  %v92_v38 = vld [vmem:[#allocation2] sm:$0xff] }
  0x68   :  { %v361_v40 = vsub.f32 1.0, %v92_v38  ;;  %523 = vlog2.f32 %v93_v37 }
  0x69   :  { %142 = vrot.lane.b32.xlu0 %v847_v39, %s678_s24  ;;  %144 = vrot.lane.b32.xlu1 %v849_v41, %s678_s24 }
  0x6a   :  { %486 = vmatpush3.bf16.msra.mxu1 %v483_v48 }
  0x6b   :  { %488 = vmatprep.subr.bf16.mxu1 %v487_v51 }
  0x6d   :  { %160 = vrot.lane.b32.xlu0 %v847_v39, %s679_s4  ;;  %162 = vrot.lane.b32.xlu1 %v849_v41, %s679_s4 }
  0x6e   :  { %490 = vmatpush3.bf16.msra.mxu1 %v487_v51 }
  0x6f   :  { %492 = vmatprep.subr.bf16.mxu1 %v491_v54 }
  0x72   :  { %494 = vmatpush3.bf16.msra.mxu1 %v491_v54 }
  0x73   :  { %496 = vmatprep.subr.bf16.mxu1 %v495_v57 }
  0x76   :  { %498 = vmatpush3.bf16.msra.mxu1 %v495_v57 }
  0x77   :  { %500 = vmatprep.subr.bf16.mxu1 %v499_v60 }
  0x7a   :  { %502 = vmatpush3.bf16.msra.mxu1 %v499_v60 }
  0x7b   :  { %504 = vmatprep.subr.bf16.mxu1 %v503_v63 }
  0x7e   :  { %506 = vmatpush3.bf16.msra.mxu1 %v503_v63 }
  0x7f   :  { %508 = vmatprep.subr.bf16.mxu1 %v507_v5 }
  0x82   :  { %510 = vmatpush3.bf16.msra.mxu1 %v507_v5 }
  0xcc   :  { %v147_v6 = vpop.permute.xlu0 %146  ;;  %v165_v10 = vpop.permute.xlu1 %164 }
  0xcd   :  { %v150_v13 = vsub.f32 %v147_v6, %v808_v2  ;;  %v168_v17 = vsub.f32 %v165_v10, %v808_v2 }
  0xcf   :  { %v152_v16 = vand.u32 2147483647, %v150_v13  ;;  %v170_v19 = vand.u32 2147483647, %v168_v17 }
  0xd0   :  { %v149_v11 = vpop.permute.xlu0 %148  ;;  %v167_v14 = vpop.permute.xlu1 %166 }
  0xd1   :  { %v151_v12 = vsub.f32 %v149_v11, %v824_v8  ;;  %v169_v18 = vsub.f32 %v167_v14, %v824_v8  ;;  %vm154_vm8 = vcmp.le.f32.partialorder %v152_v16, 1.5  ;;  %vm172_vm9 = vcmp.le.f32.partialorder %v170_v19, 1.5 }
  0xd3   :  { %v153_v15 = vand.u32 2147483647, %v151_v12  ;;  %v171_v21 = vand.u32 2147483647, %v169_v18 }
  0xd5   :  { %vm155_vm7 = vcmp.le.f32.partialorder %v153_v15, 1.5  ;;  %vm173_vm10 = vcmp.le.f32.partialorder %v171_v21, 1.5 }
  0xdb   :  { %v143_v20 = vpop.permute.xlu0 %142  ;;  %v145_v23 = vpop.permute.xlu1 %144 }
  0xdc   :  { %v156_v22 = vsel %vm154_vm8, %v143_v20, 0.0  ;;  %v157_v24 = vsel %vm155_vm7, %v145_v23, 0.0 }
  0xdd   :  { %v158_v25 = vmax.f32 %v847_v39, %v156_v22  ;;  %v159_v27 = vmax.f32 %v849_v41, %v157_v24  ;;  %v362_v39 = vsub.f32 1.0, %v93_v37  ;;  %v524_v41 = vpop.eup %523 }
  0xde   :  { %v358_v45 = vmul.f32 0.6931472, %v524_v41 }
  0xdf   :  { %v161_v26 = vpop.permute.xlu0 %160  ;;  %v163_v29 = vpop.permute.xlu1 %162  ;;  %525 = vlog2.f32 %v362_v39 }
  0xe0   :  { %v174_v28 = vsel %vm172_vm9, %v161_v26, 0.0  ;;  %v175_v30 = vsel %vm173_vm10, %v163_v29, 0.0  ;;  %527 = vlog2.f32 %v92_v38  ;;  %v360_v49 = vmax.f32 %v358_v45, -100.0 }
  0xe1   :  { %v176_v2 = vmax.f32 %v158_v25, %v174_v28  ;;  %v177_v8 = vmax.f32 %v159_v27, %v175_v30  ;;  %529 = vlog2.f32 %v361_v40 }
  0xe2   :  { %v370_v53 = vmul.f32 %v360_v49, %v816_v4 }
  0xe3   :  { %v178_v31 = vsub.f32 %v176_v2, %v819_v7  ;;  %v179_v32 = vsub.f32 %v177_v8, %v827_v9 }
  0xe5   :  { %v475_v33 = vpack.c.bf16 %v179_v32, %v178_v31 }
  0xe7   :  { %476 = vmatprep.subr.bf16.mxu0 %v475_v33 }
  0xe8   :  { %478 = vmatpush3.bf16.msra.mxu0 %v475_v33 }
  0xe9   :  { %v526_v42 = vpop.eup %525 }
  0xea   :  { %v528_v43 = vpop.eup %527  ;;  %v366_v46 = vmul.f32 0.6931472, %v526_v42 }
  0xeb   :  { %438 = vmatmul.mubr.msk.f32.vlgmr.msra.gmra.mrb[0].mxu0 %vm182_vm6, %v181_v34  ;;  %v530_v44 = vpop.eup %529  ;;  %v356_v47 = vmul.f32 0.6931472, %v528_v43 }
  0xec   :  { %v364_v48 = vmul.f32 0.6931472, %v530_v44  ;;  %v368_v50 = vmax.f32 %v366_v46, -100.0 }
  0xed   :  { %v359_v51 = vmax.f32 %v356_v47, -100.0 }
  0xee   :  { %v367_v52 = vmax.f32 %v364_v48, -100.0  ;;  %v372_v54 = vmul.f32 %v368_v50, %v827_v9 }
  0xef   :  { %v369_v55 = vmul.f32 %v359_v51, %v810_v3 }
  0xf0   :  { %v371_v56 = vmul.f32 %v367_v52, %v819_v7  ;;  %v374_v57 = vadd.f32 %v372_v54, %v370_v53 }
  0xf2   :  { %v373_v58 = vadd.f32 %v371_v56, %v369_v55  ;;  %v376_v59 = vsub.f32 0.0, %v374_v57 }
  0xf4   :  { %v375_v61 = vsub.f32 0.0, %v373_v58 }
 0x1be   :  { %v439_v35 = vpop.f32.mrb[0].mxu0 }
 0x1bf   :  { %v255_v36 = vpop.f32.mrb[1].mxu0 }
 0x1c0   :  { %472 = vmatprep.mubr.f32.mxu1 %v255_v36 }
 0x1c1   :  { %473 = vmatmul.mubr.f32.vlgmr.msra.gmra.mrb[0].mxu1 %v439_v35 }
 0x294   :  { %v474_v60 = vpop.f32.mrb[0].mxu1 }
 0x295   :  { %v352_v62 = vadd.f32 1.0, %v474_v60  ;;  %v346_v63 = vpop.f32.mrb[1].mxu1 }
 0x296   :  { %v347_v0 = vadd.f32 1.0, %v346_v63 }
 0x297   :  { %v378_v1 = vmul.f32 %v376_v59, %v352_v62 }
 0x298   :  { %v377_v5 = vmul.f32 %v375_v61, %v347_v0 }
 0x29a   :  { %v379_v6 = vadd.f32 %v378_v1, %v377_v5 }
 0x29c   :  { %380 = vadd.xlane.f32.xlu0 %v379_v6 }
 0x329   :  { %v381_v10 = vpop.xlane.xlu0 %380 }
 0x32a   :  { %v382_v4 = vrot.slane %v381_v10, 4 }
 0x32c   :  { %v383_v11 = vadd.f32 %v382_v4, %v381_v10 }
 0x32e   :  { %v384_v9 = vrot.slane %v383_v11, 2 }
 0x330   :  { %v385_v12 = vadd.f32 %v384_v9, %v383_v11 }
 0x332   :  { %v386_v3 = vrot.slane %v385_v12, 1 }
 0x334   :  { %v387_v13 = vadd.f32 %v386_v3, %v385_v12 }
 0x336   :  { %511 = vpush %v387_v13 }
 0x367   :  { %s512_s13 = spop %511 }
 0x368   :  { %v389_v7 = vstv %s512_s13 }
 0x369   :  { %391 = vst.msk [vmem:[#allocation11] sm:$0x1] %vm390_vm11, %v389_v7 }
 0x36a   :  { %652 = shalt.err (!%p649_p2)
}
 0x36b   :  { %s653_s18 = scalar_lea.hbm %s891_s6, 16 }
 0x36c   :  { %p654_p3 = scmp.ne.s32.totalorder %s891_s6, %s653_s18  ;;  %p657_p4 = scmp.lt.u32.totalorder %s653_s18, %s891_s6 }
 0x36e   :  { %p659_p5 = pnand %p657_p4, %p654_p3 }
 0x370   :  { %662 = shalt.err (!%p659_p5)
}
 0x371   :  { %401 = dma.vmem_to_hbm [thread:$0]  %s399_s12, 16, %s891_s6, [#allocation4]  }
 0x372   :  { %669 = dma.done.wait [#allocation4], 16  }
 0x373   :  { %670 = vsyncadd [#allocation4], 4294967280 }
 0x374   :  { %405 = vsyncpa [#allocation3], 1 }
 0x375   :  { %406 = vsyncpa [#allocation6], 1 }
 0x376   :  { %407 = vsyncpa [#allocation9], 1 }
 0x377   :  { %408 = vsyncpa [#allocation4], 1 }

</bundles_post_ra>
